<compile_context>
chip_gen: v7x
topology: tpu7x:2x2x1
jax: 0.10.0
libtpu: 0.0.40
codegen_flags: <defaults>
</compile_context>

<pallas_src>
import jax
import jax.numpy as jnp
from jax.experimental import pallas as pl
from jax.experimental.pallas import tpu as pltpu


def _wrapper_kernel(w_ref, b_ref, x_ref, o_ref):
    """Fused `conv1x1(x*2 - 1)` with parameters pre-folded.

    w_ref: SMEM (C_in, C_out)   folded weight  (2 * W)
    b_ref: SMEM (C_out,)        folded bias    (b - sum_c W[c, :])
    x_ref: VMEM (N*C_in, HW)    batch collapsed into the sublane axis
    o_ref: VMEM (N*C_out, HW)   batch collapsed into the sublane axis
    """
    c_in, c_out = w_ref.shape
    n = x_ref.shape[0] // c_in

    for b in range(n):                                   # unrolled, N = 2
        # Load each input row once per batch element (lane-dense, 256 lanes).
        xrows = [x_ref[pl.ds(b * c_in + c, 1), :] for c in range(c_in)]
        for o in range(c_out):                           # unrolled, C_out = 8
            # SMEM scalar weights/bias -> scalar-operand VPU multiplies.
            # Bias folded into the first FMA (no separate broadcast pass).
            acc = b_ref[o] + w_ref[0, o] * xrows[0]
            for c in range(1, c_in):
                acc = acc + w_ref[c, o] * xrows[c]
            # Lane-dense (256-wide) row store.
            o_ref[pl.ds(b * c_out + o, 1), :] = acc


def wrapper_forward(x_nchw, weight, bias):
    """x_nchw: (N, C_in, H, W) f32; weight: (C_in, C_out); bias: (C_out,).

    Returns (N, C_out, H, W) f32 = Conv1x1(x * 2 - 1)  (the synthetic model's
    first output, as selected by the Wrapper's `[0]`).
    """
    N, C_in, H, W = x_nchw.shape
    C_out = weight.shape[1]
    HW = H * W

    # Pure reshape (no data movement): (N, C_in, H, W) -> (N*C_in, HW).
    x2 = x_nchw.reshape(N * C_in, HW)

    # Fold `x*2 - 1` into the conv parameters (one-time parameter transform):
    #   W^T (2x - 1) + b == (2W)^T x + (b - sum_c W[c, :])
    w_folded = (2.0 * weight).astype(jnp.float32)                     # (C_in, C_out)
    b_folded = (bias - jnp.sum(weight, axis=0)).astype(jnp.float32)   # (C_out,)

    flops = 2 * N * C_out * C_in * HW
    bytes_accessed = 4 * (N * C_in * HW + N * C_out * HW + C_in * C_out + C_out)

    out = pl.pallas_call(
        _wrapper_kernel,
        out_shape=jax.ShapeDtypeStruct((N * C_out, HW), jnp.float32),
        # No grid: a single kernel invocation over the full (tiny) arrays.
        in_specs=[
            pl.BlockSpec(memory_space=pltpu.MemorySpace.SMEM),   # folded weight
            pl.BlockSpec(memory_space=pltpu.MemorySpace.SMEM),   # folded bias
            pl.BlockSpec(memory_space=pltpu.MemorySpace.VMEM),   # x (8, 256)
        ],
        out_specs=pl.BlockSpec(memory_space=pltpu.MemorySpace.VMEM),
        cost_estimate=pl.CostEstimate(
            flops=flops, transcendentals=0, bytes_accessed=bytes_accessed),
    )(w_folded, b_folded, x2)

    # (N*C_out, HW) -> (N, C_out, H, W): pure reshape, no transpose.
    return out.reshape(N, C_out, H, W)


if __name__ == "__main__":
    key = jax.random.PRNGKey(0)
    k_x, k_w, k_b = jax.random.split(key, 3)

    N, C_in, H, W = 2, 4, 16, 16
    C_out = 8

    # Deterministic example input and synthetic inner-model parameters.
    x = jax.random.uniform(k_x, (N, C_in, H, W), dtype=jnp.float32)      # in [0, 1)
    weight = jax.random.normal(k_w, (C_in, C_out), dtype=jnp.float32) * 0.1
    bias = jax.random.normal(k_b, (C_out,), dtype=jnp.float32) * 0.01

    y = wrapper_forward(x, weight, bias)
    jax.block_until_ready(y)

    # Pure-JAX reference of the same computation (rescale + 1x1 conv, output [0]).
    xn = x * 2.0 - 1.0
    ref = jnp.einsum("nchw,co->nohw", xn, weight) + bias[None, :, None, None]
    assert y.shape == (N, C_out, H, W)
    assert jnp.allclose(y, ref, atol=1e-5, rtol=1e-5)

    print("KERNEL_OK")
</pallas_src>

<mosaic_0001>
module attributes {stable_mosaic.version = 11 : i64} {
  func.func @_wrapper_kernel(%arg0: memref<4x8xf32, #tpu.memory_space<smem>>, %arg1: memref<8xf32, #tpu.memory_space<smem>>, %arg2: memref<8x256xf32, #tpu.memory_space<vmem>>, %arg3: memref<16x256xf32, #tpu.memory_space<vmem>>) attributes {dimension_semantics = [], scalar_prefetch = 0 : i64, scratch_operands = 0 : i64, tpu.core_type = #tpu.core_type<tc>} {
    %c0 = arith.constant 0 : index
    %c0_0 = arith.constant 0 : index
    %0 = vector.load %arg2[%c0, %c0_0] : memref<8x256xf32, #tpu.memory_space<vmem>>, vector<1x256xf32>
    %c1 = arith.constant 1 : index
    %c0_1 = arith.constant 0 : index
    %1 = vector.load %arg2[%c1, %c0_1] : memref<8x256xf32, #tpu.memory_space<vmem>>, vector<1x256xf32>
    %c2 = arith.constant 2 : index
    %c0_2 = arith.constant 0 : index
    %2 = vector.load %arg2[%c2, %c0_2] : memref<8x256xf32, #tpu.memory_space<vmem>>, vector<1x256xf32>
    %c3 = arith.constant 3 : index
    %c0_3 = arith.constant 0 : index
    %3 = vector.load %arg2[%c3, %c0_3] : memref<8x256xf32, #tpu.memory_space<vmem>>, vector<1x256xf32>
    %c0_4 = arith.constant 0 : index
    %4 = memref.load %arg1[%c0_4] : memref<8xf32, #tpu.memory_space<smem>>
    %c0_5 = arith.constant 0 : index
    %c0_6 = arith.constant 0 : index
    %5 = memref.load %arg0[%c0_5, %c0_6] : memref<4x8xf32, #tpu.memory_space<smem>>
    %6 = vector.broadcast %5 : f32 to vector<1x256xf32>
    %7 = arith.mulf %6, %0 : vector<1x256xf32>
    %8 = vector.broadcast %4 : f32 to vector<1x256xf32>
    %9 = arith.addf %8, %7 : vector<1x256xf32>
    %c1_7 = arith.constant 1 : index
    %c0_8 = arith.constant 0 : index
    %10 = memref.load %arg0[%c1_7, %c0_8] : memref<4x8xf32, #tpu.memory_space<smem>>
    %11 = vector.broadcast %10 : f32 to vector<1x256xf32>
    %12 = arith.mulf %11, %1 : vector<1x256xf32>
    %13 = arith.addf %9, %12 : vector<1x256xf32>
    %c2_9 = arith.constant 2 : index
    %c0_10 = arith.constant 0 : index
    %14 = memref.load %arg0[%c2_9, %c0_10] : memref<4x8xf32, #tpu.memory_space<smem>>
    %15 = vector.broadcast %14 : f32 to vector<1x256xf32>
    %16 = arith.mulf %15, %2 : vector<1x256xf32>
    %17 = arith.addf %13, %16 : vector<1x256xf32>
    %c3_11 = arith.constant 3 : index
    %c0_12 = arith.constant 0 : index
    %18 = memref.load %arg0[%c3_11, %c0_12] : memref<4x8xf32, #tpu.memory_space<smem>>
    %19 = vector.broadcast %18 : f32 to vector<1x256xf32>
    %20 = arith.mulf %19, %3 : vector<1x256xf32>
    %21 = arith.addf %17, %20 : vector<1x256xf32>
    %c0_13 = arith.constant 0 : index
    %c0_14 = arith.constant 0 : index
    %22 = vector.load %arg3[%c0_13, %c0_14] : memref<16x256xf32, #tpu.memory_space<vmem>>, vector<1x256xf32>
    tpu.vector_store %arg3[%c0_13, %c0_14], %21 {strides = array<i32>} : memref<16x256xf32, #tpu.memory_space<vmem>>, vector<1x256xf32>,
    %c1_15 = arith.constant 1 : index
    %23 = memref.load %arg1[%c1_15] : memref<8xf32, #tpu.memory_space<smem>>
    %c0_16 = arith.constant 0 : index
    %c1_17 = arith.constant 1 : index
    %24 = memref.load %arg0[%c0_16, %c1_17] : memref<4x8xf32, #tpu.memory_space<smem>>
    %25 = vector.broadcast %24 : f32 to vector<1x256xf32>
    %26 = arith.mulf %25, %0 : vector<1x256xf32>
    %27 = vector.broadcast %23 : f32 to vector<1x256xf32>
    %28 = arith.addf %27, %26 : vector<1x256xf32>
    %c1_18 = arith.constant 1 : index
    %c1_19 = arith.constant 1 : index
    %29 = memref.load %arg0[%c1_18, %c1_19] : memref<4x8xf32, #tpu.memory_space<smem>>
    %30 = vector.broadcast %29 : f32 to vector<1x256xf32>
    %31 = arith.mulf %30, %1 : vector<1x256xf32>
    %32 = arith.addf %28, %31 : vector<1x256xf32>
    %c2_20 = arith.constant 2 : index
    %c1_21 = arith.constant 1 : index
    %33 = memref.load %arg0[%c2_20, %c1_21] : memref<4x8xf32, #tpu.memory_space<smem>>
    %34 = vector.broadcast %33 : f32 to vector<1x256xf32>
    %35 = arith.mulf %34, %2 : vector<1x256xf32>
    %36 = arith.addf %32, %35 : vector<1x256xf32>
    %c3_22 = arith.constant 3 : index
    %c1_23 = arith.constant 1 : index
    %37 = memref.load %arg0[%c3_22, %c1_23] : memref<4x8xf32, #tpu.memory_space<smem>>
    %38 = vector.broadcast %37 : f32 to vector<1x256xf32>
    %39 = arith.mulf %38, %3 : vector<1x256xf32>
    %40 = arith.addf %36, %39 : vector<1x256xf32>
    %c1_24 = arith.constant 1 : index
    %c0_25 = arith.constant 0 : index
    %41 = vector.load %arg3[%c1_24, %c0_25] : memref<16x256xf32, #tpu.memory_space<vmem>>, vector<1x256xf32>
    tpu.vector_store %arg3[%c1_24, %c0_25], %40 {strides = array<i32>} : memref<16x256xf32, #tpu.memory_space<vmem>>, vector<1x256xf32>,
    %c2_26 = arith.constant 2 : index
    %42 = memref.load %arg1[%c2_26] : memref<8xf32, #tpu.memory_space<smem>>
    %c0_27 = arith.constant 0 : index
    %c2_28 = arith.constant 2 : index
    %43 = memref.load %arg0[%c0_27, %c2_28] : memref<4x8xf32, #tpu.memory_space<smem>>
    %44 = vector.broadcast %43 : f32 to vector<1x256xf32>
    %45 = arith.mulf %44, %0 : vector<1x256xf32>
    %46 = vector.broadcast %42 : f32 to vector<1x256xf32>
    %47 = arith.addf %46, %45 : vector<1x256xf32>
    %c1_29 = arith.constant 1 : index
    %c2_30 = arith.constant 2 : index
    %48 = memref.load %arg0[%c1_29, %c2_30] : memref<4x8xf32, #tpu.memory_space<smem>>
    %49 = vector.broadcast %48 : f32 to vector<1x256xf32>
    %50 = arith.mulf %49, %1 : vector<1x256xf32>
    %51 = arith.addf %47, %50 : vector<1x256xf32>
    %c2_31 = arith.constant 2 : index
    %c2_32 = arith.constant 2 : index
    %52 = memref.load %arg0[%c2_31, %c2_32] : memref<4x8xf32, #tpu.memory_space<smem>>
    %53 = vector.broadcast %52 : f32 to vector<1x256xf32>
    %54 = arith.mulf %53, %2 : vector<1x256xf32>
    %55 = arith.addf %51, %54 : vector<1x256xf32>
    %c3_33 = arith.constant 3 : index
    %c2_34 = arith.constant 2 : index
    %56 = memref.load %arg0[%c3_33, %c2_34] : memref<4x8xf32, #tpu.memory_space<smem>>
    %57 = vector.broadcast %56 : f32 to vector<1x256xf32>
    %58 = arith.mulf %57, %3 : vector<1x256xf32>
    %59 = arith.addf %55, %58 : vector<1x256xf32>
    %c2_35 = arith.constant 2 : index
    %c0_36 = arith.constant 0 : index
    %60 = vector.load %arg3[%c2_35, %c0_36] : memref<16x256xf32, #tpu.memory_space<vmem>>, vector<1x256xf32>
    tpu.vector_store %arg3[%c2_35, %c0_36], %59 {strides = array<i32>} : memref<16x256xf32, #tpu.memory_space<vmem>>, vector<1x256xf32>,
    %c3_37 = arith.constant 3 : index
    %61 = memref.load %arg1[%c3_37] : memref<8xf32, #tpu.memory_space<smem>>
    %c0_38 = arith.constant 0 : index
    %c3_39 = arith.constant 3 : index
    %62 = memref.load %arg0[%c0_38, %c3_39] : memref<4x8xf32, #tpu.memory_space<smem>>
    %63 = vector.broadcast %62 : f32 to vector<1x256xf32>
    %64 = arith.mulf %63, %0 : vector<1x256xf32>
    %65 = vector.broadcast %61 : f32 to vector<1x256xf32>
    %66 = arith.addf %65, %64 : vector<1x256xf32>
    %c1_40 = arith.constant 1 : index
    %c3_41 = arith.constant 3 : index
    %67 = memref.load %arg0[%c1_40, %c3_41] : memref<4x8xf32, #tpu.memory_space<smem>>
    %68 = vector.broadcast %67 : f32 to vector<1x256xf32>
    %69 = arith.mulf %68, %1 : vector<1x256xf32>
    %70 = arith.addf %66, %69 : vector<1x256xf32>
    %c2_42 = arith.constant 2 : index
    %c3_43 = arith.constant 3 : index
    %71 = memref.load %arg0[%c2_42, %c3_43] : memref<4x8xf32, #tpu.memory_space<smem>>
    %72 = vector.broadcast %71 : f32 to vector<1x256xf32>
    %73 = arith.mulf %72, %2 : vector<1x256xf32>
    %74 = arith.addf %70, %73 : vector<1x256xf32>
    %c3_44 = arith.constant 3 : index
    %c3_45 = arith.constant 3 : index
    %75 = memref.load %arg0[%c3_44, %c3_45] : memref<4x8xf32, #tpu.memory_space<smem>>
    %76 = vector.broadcast %75 : f32 to vector<1x256xf32>
    %77 = arith.mulf %76, %3 : vector<1x256xf32>
    %78 = arith.addf %74, %77 : vector<1x256xf32>
    %c3_46 = arith.constant 3 : index
    %c0_47 = arith.constant 0 : index
    %79 = vector.load %arg3[%c3_46, %c0_47] : memref<16x256xf32, #tpu.memory_space<vmem>>, vector<1x256xf32>
    tpu.vector_store %arg3[%c3_46, %c0_47], %78 {strides = array<i32>} : memref<16x256xf32, #tpu.memory_space<vmem>>, vector<1x256xf32>,
    %c4 = arith.constant 4 : index
    %80 = memref.load %arg1[%c4] : memref<8xf32, #tpu.memory_space<smem>>
    %c0_48 = arith.constant 0 : index
    %c4_49 = arith.constant 4 : index
    %81 = memref.load %arg0[%c0_48, %c4_49] : memref<4x8xf32, #tpu.memory_space<smem>>
    %82 = vector.broadcast %81 : f32 to vector<1x256xf32>
    %83 = arith.mulf %82, %0 : vector<1x256xf32>
    %84 = vector.broadcast %80 : f32 to vector<1x256xf32>
    %85 = arith.addf %84, %83 : vector<1x256xf32>
    %c1_50 = arith.constant 1 : index
    %c4_51 = arith.constant 4 : index
    %86 = memref.load %arg0[%c1_50, %c4_51] : memref<4x8xf32, #tpu.memory_space<smem>>
    %87 = vector.broadcast %86 : f32 to vector<1x256xf32>
    %88 = arith.mulf %87, %1 : vector<1x256xf32>
    %89 = arith.addf %85, %88 : vector<1x256xf32>
    %c2_52 = arith.constant 2 : index
    %c4_53 = arith.constant 4 : index
    %90 = memref.load %arg0[%c2_52, %c4_53] : memref<4x8xf32, #tpu.memory_space<smem>>
    %91 = vector.broadcast %90 : f32 to vector<1x256xf32>
    %92 = arith.mulf %91, %2 : vector<1x256xf32>
    %93 = arith.addf %89, %92 : vector<1x256xf32>
    %c3_54 = arith.constant 3 : index
    %c4_55 = arith.constant 4 : index
    %94 = memref.load %arg0[%c3_54, %c4_55] : memref<4x8xf32, #tpu.memory_space<smem>>
    %95 = vector.broadcast %94 : f32 to vector<1x256xf32>
    %96 = arith.mulf %95, %3 : vector<1x256xf32>
    %97 = arith.addf %93, %96 : vector<1x256xf32>
    %c4_56 = arith.constant 4 : index
    %c0_57 = arith.constant 0 : index
    %98 = vector.load %arg3[%c4_56, %c0_57] : memref<16x256xf32, #tpu.memory_space<vmem>>, vector<1x256xf32>
    tpu.vector_store %arg3[%c4_56, %c0_57], %97 {strides = array<i32>} : memref<16x256xf32, #tpu.memory_space<vmem>>, vector<1x256xf32>,
    %c5 = arith.constant 5 : index
    %99 = memref.load %arg1[%c5] : memref<8xf32, #tpu.memory_space<smem>>
    %c0_58 = arith.constant 0 : index
    %c5_59 = arith.constant 5 : index
    %100 = memref.load %arg0[%c0_58, %c5_59] : memref<4x8xf32, #tpu.memory_space<smem>>
    %101 = vector.broadcast %100 : f32 to vector<1x256xf32>
    %102 = arith.mulf %101, %0 : vector<1x256xf32>
    %103 = vector.broadcast %99 : f32 to vector<1x256xf32>
    %104 = arith.addf %103, %102 : vector<1x256xf32>
    %c1_60 = arith.constant 1 : index
    %c5_61 = arith.constant 5 : index
    %105 = memref.load %arg0[%c1_60, %c5_61] : memref<4x8xf32, #tpu.memory_space<smem>>
    %106 = vector.broadcast %105 : f32 to vector<1x256xf32>
    %107 = arith.mulf %106, %1 : vector<1x256xf32>
    %108 = arith.addf %104, %107 : vector<1x256xf32>
    %c2_62 = arith.constant 2 : index
    %c5_63 = arith.constant 5 : index
    %109 = memref.load %arg0[%c2_62, %c5_63] : memref<4x8xf32, #tpu.memory_space<smem>>
    %110 = vector.broadcast %109 : f32 to vector<1x256xf32>
    %111 = arith.mulf %110, %2 : vector<1x256xf32>
    %112 = arith.addf %108, %111 : vector<1x256xf32>
    %c3_64 = arith.constant 3 : index
    %c5_65 = arith.constant 5 : index
    %113 = memref.load %arg0[%c3_64, %c5_65] : memref<4x8xf32, #tpu.memory_space<smem>>
    %114 = vector.broadcast %113 : f32 to vector<1x256xf32>
    %115 = arith.mulf %114, %3 : vector<1x256xf32>
    %116 = arith.addf %112, %115 : vector<1x256xf32>
    %c5_66 = arith.constant 5 : index
    %c0_67 = arith.constant 0 : index
    %117 = vector.load %arg3[%c5_66, %c0_67] : memref<16x256xf32, #tpu.memory_space<vmem>>, vector<1x256xf32>
    tpu.vector_store %arg3[%c5_66, %c0_67], %116 {strides = array<i32>} : memref<16x256xf32, #tpu.memory_space<vmem>>, vector<1x256xf32>,
    %c6 = arith.constant 6 : index
    %118 = memref.load %arg1[%c6] : memref<8xf32, #tpu.memory_space<smem>>
    %c0_68 = arith.constant 0 : index
    %c6_69 = arith.constant 6 : index
    %119 = memref.load %arg0[%c0_68, %c6_69] : memref<4x8xf32, #tpu.memory_space<smem>>
    %120 = vector.broadcast %119 : f32 to vector<1x256xf32>
    %121 = arith.mulf %120, %0 : vector<1x256xf32>
    %122 = vector.broadcast %118 : f32 to vector<1x256xf32>
    %123 = arith.addf %122, %121 : vector<1x256xf32>
    %c1_70 = arith.constant 1 : index
    %c6_71 = arith.constant 6 : index
    %124 = memref.load %arg0[%c1_70, %c6_71] : memref<4x8xf32, #tpu.memory_space<smem>>
    %125 = vector.broadcast %124 : f32 to vector<1x256xf32>
    %126 = arith.mulf %125, %1 : vector<1x256xf32>
    %127 = arith.addf %123, %126 : vector<1x256xf32>
    %c2_72 = arith.constant 2 : index
    %c6_73 = arith.constant 6 : index
    %128 = memref.load %arg0[%c2_72, %c6_73] : memref<4x8xf32, #tpu.memory_space<smem>>
    %129 = vector.broadcast %128 : f32 to vector<1x256xf32>
    %130 = arith.mulf %129, %2 : vector<1x256xf32>
    %131 = arith.addf %127, %130 : vector<1x256xf32>
    %c3_74 = arith.constant 3 : index
    %c6_75 = arith.constant 6 : index
    %132 = memref.load %arg0[%c3_74, %c6_75] : memref<4x8xf32, #tpu.memory_space<smem>>
    %133 = vector.broadcast %132 : f32 to vector<1x256xf32>
    %134 = arith.mulf %133, %3 : vector<1x256xf32>
    %135 = arith.addf %131, %134 : vector<1x256xf32>
    %c6_76 = arith.constant 6 : index
    %c0_77 = arith.constant 0 : index
    %136 = vector.load %arg3[%c6_76, %c0_77] : memref<16x256xf32, #tpu.memory_space<vmem>>, vector<1x256xf32>
    tpu.vector_store %arg3[%c6_76, %c0_77], %135 {strides = array<i32>} : memref<16x256xf32, #tpu.memory_space<vmem>>, vector<1x256xf32>,
    %c7 = arith.constant 7 : index
    %137 = memref.load %arg1[%c7] : memref<8xf32, #tpu.memory_space<smem>>
    %c0_78 = arith.constant 0 : index
    %c7_79 = arith.constant 7 : index
    %138 = memref.load %arg0[%c0_78, %c7_79] : memref<4x8xf32, #tpu.memory_space<smem>>
    %139 = vector.broadcast %138 : f32 to vector<1x256xf32>
    %140 = arith.mulf %139, %0 : vector<1x256xf32>
    %141 = vector.broadcast %137 : f32 to vector<1x256xf32>
    %142 = arith.addf %141, %140 : vector<1x256xf32>
    %c1_80 = arith.constant 1 : index
    %c7_81 = arith.constant 7 : index
    %143 = memref.load %arg0[%c1_80, %c7_81] : memref<4x8xf32, #tpu.memory_space<smem>>
    %144 = vector.broadcast %143 : f32 to vector<1x256xf32>
    %145 = arith.mulf %144, %1 : vector<1x256xf32>
    %146 = arith.addf %142, %145 : vector<1x256xf32>
    %c2_82 = arith.constant 2 : index
    %c7_83 = arith.constant 7 : index
    %147 = memref.load %arg0[%c2_82, %c7_83] : memref<4x8xf32, #tpu.memory_space<smem>>
    %148 = vector.broadcast %147 : f32 to vector<1x256xf32>
    %149 = arith.mulf %148, %2 : vector<1x256xf32>
    %150 = arith.addf %146, %149 : vector<1x256xf32>
    %c3_84 = arith.constant 3 : index
    %c7_85 = arith.constant 7 : index
    %151 = memref.load %arg0[%c3_84, %c7_85] : memref<4x8xf32, #tpu.memory_space<smem>>
    %152 = vector.broadcast %151 : f32 to vector<1x256xf32>
    %153 = arith.mulf %152, %3 : vector<1x256xf32>
    %154 = arith.addf %150, %153 : vector<1x256xf32>
    %c7_86 = arith.constant 7 : index
    %c0_87 = arith.constant 0 : index
    %155 = vector.load %arg3[%c7_86, %c0_87] : memref<16x256xf32, #tpu.memory_space<vmem>>, vector<1x256xf32>
    tpu.vector_store %arg3[%c7_86, %c0_87], %154 {strides = array<i32>} : memref<16x256xf32, #tpu.memory_space<vmem>>, vector<1x256xf32>,
    %c4_88 = arith.constant 4 : index
    %c0_89 = arith.constant 0 : index
    %156 = vector.load %arg2[%c4_88, %c0_89] : memref<8x256xf32, #tpu.memory_space<vmem>>, vector<1x256xf32>
    %c5_90 = arith.constant 5 : index
    %c0_91 = arith.constant 0 : index
    %157 = vector.load %arg2[%c5_90, %c0_91] : memref<8x256xf32, #tpu.memory_space<vmem>>, vector<1x256xf32>
    %c6_92 = arith.constant 6 : index
    %c0_93 = arith.constant 0 : index
    %158 = vector.load %arg2[%c6_92, %c0_93] : memref<8x256xf32, #tpu.memory_space<vmem>>, vector<1x256xf32>
    %c7_94 = arith.constant 7 : index
    %c0_95 = arith.constant 0 : index
    %159 = vector.load %arg2[%c7_94, %c0_95] : memref<8x256xf32, #tpu.memory_space<vmem>>, vector<1x256xf32>
    %c0_96 = arith.constant 0 : index
    %160 = memref.load %arg1[%c0_96] : memref<8xf32, #tpu.memory_space<smem>>
    %c0_97 = arith.constant 0 : index
    %c0_98 = arith.constant 0 : index
    %161 = memref.load %arg0[%c0_97, %c0_98] : memref<4x8xf32, #tpu.memory_space<smem>>
    %162 = vector.broadcast %161 : f32 to vector<1x256xf32>
    %163 = arith.mulf %162, %156 : vector<1x256xf32>
    %164 = vector.broadcast %160 : f32 to vector<1x256xf32>
    %165 = arith.addf %164, %163 : vector<1x256xf32>
    %c1_99 = arith.constant 1 : index
    %c0_100 = arith.constant 0 : index
    %166 = memref.load %arg0[%c1_99, %c0_100] : memref<4x8xf32, #tpu.memory_space<smem>>
    %167 = vector.broadcast %166 : f32 to vector<1x256xf32>
    %168 = arith.mulf %167, %157 : vector<1x256xf32>
    %169 = arith.addf %165, %168 : vector<1x256xf32>
    %c2_101 = arith.constant 2 : index
    %c0_102 = arith.constant 0 : index
    %170 = memref.load %arg0[%c2_101, %c0_102] : memref<4x8xf32, #tpu.memory_space<smem>>
    %171 = vector.broadcast %170 : f32 to vector<1x256xf32>
    %172 = arith.mulf %171, %158 : vector<1x256xf32>
    %173 = arith.addf %169, %172 : vector<1x256xf32>
    %c3_103 = arith.constant 3 : index
    %c0_104 = arith.constant 0 : index
    %174 = memref.load %arg0[%c3_103, %c0_104] : memref<4x8xf32, #tpu.memory_space<smem>>
    %175 = vector.broadcast %174 : f32 to vector<1x256xf32>
    %176 = arith.mulf %175, %159 : vector<1x256xf32>
    %177 = arith.addf %173, %176 : vector<1x256xf32>
    %c8 = arith.constant 8 : index
    %c0_105 = arith.constant 0 : index
    %178 = vector.load %arg3[%c8, %c0_105] : memref<16x256xf32, #tpu.memory_space<vmem>>, vector<1x256xf32>
    tpu.vector_store %arg3[%c8, %c0_105], %177 {strides = array<i32>} : memref<16x256xf32, #tpu.memory_space<vmem>>, vector<1x256xf32>,
    %c1_106 = arith.constant 1 : index
    %179 = memref.load %arg1[%c1_106] : memref<8xf32, #tpu.memory_space<smem>>
    %c0_107 = arith.constant 0 : index
    %c1_108 = arith.constant 1 : index
    %180 = memref.load %arg0[%c0_107, %c1_108] : memref<4x8xf32, #tpu.memory_space<smem>>
    %181 = vector.broadcast %180 : f32 to vector<1x256xf32>
    %182 = arith.mulf %181, %156 : vector<1x256xf32>
    %183 = vector.broadcast %179 : f32 to vector<1x256xf32>
    %184 = arith.addf %183, %182 : vector<1x256xf32>
    %c1_109 = arith.constant 1 : index
    %c1_110 = arith.constant 1 : index
    %185 = memref.load %arg0[%c1_109, %c1_110] : memref<4x8xf32, #tpu.memory_space<smem>>
    %186 = vector.broadcast %185 : f32 to vector<1x256xf32>
    %187 = arith.mulf %186, %157 : vector<1x256xf32>
    %188 = arith.addf %184, %187 : vector<1x256xf32>
    %c2_111 = arith.constant 2 : index
    %c1_112 = arith.constant 1 : index
    %189 = memref.load %arg0[%c2_111, %c1_112] : memref<4x8xf32, #tpu.memory_space<smem>>
    %190 = vector.broadcast %189 : f32 to vector<1x256xf32>
    %191 = arith.mulf %190, %158 : vector<1x256xf32>
    %192 = arith.addf %188, %191 : vector<1x256xf32>
    %c3_113 = arith.constant 3 : index
    %c1_114 = arith.constant 1 : index
    %193 = memref.load %arg0[%c3_113, %c1_114] : memref<4x8xf32, #tpu.memory_space<smem>>
    %194 = vector.broadcast %193 : f32 to vector<1x256xf32>
    %195 = arith.mulf %194, %159 : vector<1x256xf32>
    %196 = arith.addf %192, %195 : vector<1x256xf32>
    %c9 = arith.constant 9 : index
    %c0_115 = arith.constant 0 : index
    %197 = vector.load %arg3[%c9, %c0_115] : memref<16x256xf32, #tpu.memory_space<vmem>>, vector<1x256xf32>
    tpu.vector_store %arg3[%c9, %c0_115], %196 {strides = array<i32>} : memref<16x256xf32, #tpu.memory_space<vmem>>, vector<1x256xf32>,
    %c2_116 = arith.constant 2 : index
    %198 = memref.load %arg1[%c2_116] : memref<8xf32, #tpu.memory_space<smem>>
    %c0_117 = arith.constant 0 : index
    %c2_118 = arith.constant 2 : index
    %199 = memref.load %arg0[%c0_117, %c2_118] : memref<4x8xf32, #tpu.memory_space<smem>>
    %200 = vector.broadcast %199 : f32 to vector<1x256xf32>
    %201 = arith.mulf %200, %156 : vector<1x256xf32>
    %202 = vector.broadcast %198 : f32 to vector<1x256xf32>
    %203 = arith.addf %202, %201 : vector<1x256xf32>
    %c1_119 = arith.constant 1 : index
    %c2_120 = arith.constant 2 : index
    %204 = memref.load %arg0[%c1_119, %c2_120] : memref<4x8xf32, #tpu.memory_space<smem>>
    %205 = vector.broadcast %204 : f32 to vector<1x256xf32>
    %206 = arith.mulf %205, %157 : vector<1x256xf32>
    %207 = arith.addf %203, %206 : vector<1x256xf32>
    %c2_121 = arith.constant 2 : index
    %c2_122 = arith.constant 2 : index
    %208 = memref.load %arg0[%c2_121, %c2_122] : memref<4x8xf32, #tpu.memory_space<smem>>
    %209 = vector.broadcast %208 : f32 to vector<1x256xf32>
    %210 = arith.mulf %209, %158 : vector<1x256xf32>
    %211 = arith.addf %207, %210 : vector<1x256xf32>
    %c3_123 = arith.constant 3 : index
    %c2_124 = arith.constant 2 : index
    %212 = memref.load %arg0[%c3_123, %c2_124] : memref<4x8xf32, #tpu.memory_space<smem>>
    %213 = vector.broadcast %212 : f32 to vector<1x256xf32>
    %214 = arith.mulf %213, %159 : vector<1x256xf32>
    %215 = arith.addf %211, %214 : vector<1x256xf32>
    %c10 = arith.constant 10 : index
    %c0_125 = arith.constant 0 : index
    %216 = vector.load %arg3[%c10, %c0_125] : memref<16x256xf32, #tpu.memory_space<vmem>>, vector<1x256xf32>
    tpu.vector_store %arg3[%c10, %c0_125], %215 {strides = array<i32>} : memref<16x256xf32, #tpu.memory_space<vmem>>, vector<1x256xf32>,
    %c3_126 = arith.constant 3 : index
    %217 = memref.load %arg1[%c3_126] : memref<8xf32, #tpu.memory_space<smem>>
    %c0_127 = arith.constant 0 : index
    %c3_128 = arith.constant 3 : index
    %218 = memref.load %arg0[%c0_127, %c3_128] : memref<4x8xf32, #tpu.memory_space<smem>>
    %219 = vector.broadcast %218 : f32 to vector<1x256xf32>
    %220 = arith.mulf %219, %156 : vector<1x256xf32>
    %221 = vector.broadcast %217 : f32 to vector<1x256xf32>
    %222 = arith.addf %221, %220 : vector<1x256xf32>
    %c1_129 = arith.constant 1 : index
    %c3_130 = arith.constant 3 : index
    %223 = memref.load %arg0[%c1_129, %c3_130] : memref<4x8xf32, #tpu.memory_space<smem>>
    %224 = vector.broadcast %223 : f32 to vector<1x256xf32>
    %225 = arith.mulf %224, %157 : vector<1x256xf32>
    %226 = arith.addf %222, %225 : vector<1x256xf32>
    %c2_131 = arith.constant 2 : index
    %c3_132 = arith.constant 3 : index
    %227 = memref.load %arg0[%c2_131, %c3_132] : memref<4x8xf32, #tpu.memory_space<smem>>
    %228 = vector.broadcast %227 : f32 to vector<1x256xf32>
    %229 = arith.mulf %228, %158 : vector<1x256xf32>
    %230 = arith.addf %226, %229 : vector<1x256xf32>
    %c3_133 = arith.constant 3 : index
    %c3_134 = arith.constant 3 : index
    %231 = memref.load %arg0[%c3_133, %c3_134] : memref<4x8xf32, #tpu.memory_space<smem>>
    %232 = vector.broadcast %231 : f32 to vector<1x256xf32>
    %233 = arith.mulf %232, %159 : vector<1x256xf32>
    %234 = arith.addf %230, %233 : vector<1x256xf32>
    %c11 = arith.constant 11 : index
    %c0_135 = arith.constant 0 : index
    %235 = vector.load %arg3[%c11, %c0_135] : memref<16x256xf32, #tpu.memory_space<vmem>>, vector<1x256xf32>
    tpu.vector_store %arg3[%c11, %c0_135], %234 {strides = array<i32>} : memref<16x256xf32, #tpu.memory_space<vmem>>, vector<1x256xf32>,
    %c4_136 = arith.constant 4 : index
    %236 = memref.load %arg1[%c4_136] : memref<8xf32, #tpu.memory_space<smem>>
    %c0_137 = arith.constant 0 : index
    %c4_138 = arith.constant 4 : index
    %237 = memref.load %arg0[%c0_137, %c4_138] : memref<4x8xf32, #tpu.memory_space<smem>>
    %238 = vector.broadcast %237 : f32 to vector<1x256xf32>
    %239 = arith.mulf %238, %156 : vector<1x256xf32>
    %240 = vector.broadcast %236 : f32 to vector<1x256xf32>
    %241 = arith.addf %240, %239 : vector<1x256xf32>
    %c1_139 = arith.constant 1 : index
    %c4_140 = arith.constant 4 : index
    %242 = memref.load %arg0[%c1_139, %c4_140] : memref<4x8xf32, #tpu.memory_space<smem>>
    %243 = vector.broadcast %242 : f32 to vector<1x256xf32>
    %244 = arith.mulf %243, %157 : vector<1x256xf32>
    %245 = arith.addf %241, %244 : vector<1x256xf32>
    %c2_141 = arith.constant 2 : index
    %c4_142 = arith.constant 4 : index
    %246 = memref.load %arg0[%c2_141, %c4_142] : memref<4x8xf32, #tpu.memory_space<smem>>
    %247 = vector.broadcast %246 : f32 to vector<1x256xf32>
    %248 = arith.mulf %247, %158 : vector<1x256xf32>
    %249 = arith.addf %245, %248 : vector<1x256xf32>
    %c3_143 = arith.constant 3 : index
    %c4_144 = arith.constant 4 : index
    %250 = memref.load %arg0[%c3_143, %c4_144] : memref<4x8xf32, #tpu.memory_space<smem>>
    %251 = vector.broadcast %250 : f32 to vector<1x256xf32>
    %252 = arith.mulf %251, %159 : vector<1x256xf32>
    %253 = arith.addf %249, %252 : vector<1x256xf32>
    %c12 = arith.constant 12 : index
    %c0_145 = arith.constant 0 : index
    %254 = vector.load %arg3[%c12, %c0_145] : memref<16x256xf32, #tpu.memory_space<vmem>>, vector<1x256xf32>
    tpu.vector_store %arg3[%c12, %c0_145], %253 {strides = array<i32>} : memref<16x256xf32, #tpu.memory_space<vmem>>, vector<1x256xf32>,
    %c5_146 = arith.constant 5 : index
    %255 = memref.load %arg1[%c5_146] : memref<8xf32, #tpu.memory_space<smem>>
    %c0_147 = arith.constant 0 : index
    %c5_148 = arith.constant 5 : index
    %256 = memref.load %arg0[%c0_147, %c5_148] : memref<4x8xf32, #tpu.memory_space<smem>>
    %257 = vector.broadcast %256 : f32 to vector<1x256xf32>
    %258 = arith.mulf %257, %156 : vector<1x256xf32>
    %259 = vector.broadcast %255 : f32 to vector<1x256xf32>
    %260 = arith.addf %259, %258 : vector<1x256xf32>
    %c1_149 = arith.constant 1 : index
    %c5_150 = arith.constant 5 : index
    %261 = memref.load %arg0[%c1_149, %c5_150] : memref<4x8xf32, #tpu.memory_space<smem>>
    %262 = vector.broadcast %261 : f32 to vector<1x256xf32>
    %263 = arith.mulf %262, %157 : vector<1x256xf32>
    %264 = arith.addf %260, %263 : vector<1x256xf32>
    %c2_151 = arith.constant 2 : index
    %c5_152 = arith.constant 5 : index
    %265 = memref.load %arg0[%c2_151, %c5_152] : memref<4x8xf32, #tpu.memory_space<smem>>
    %266 = vector.broadcast %265 : f32 to vector<1x256xf32>
    %267 = arith.mulf %266, %158 : vector<1x256xf32>
    %268 = arith.addf %264, %267 : vector<1x256xf32>
    %c3_153 = arith.constant 3 : index
    %c5_154 = arith.constant 5 : index
    %269 = memref.load %arg0[%c3_153, %c5_154] : memref<4x8xf32, #tpu.memory_space<smem>>
    %270 = vector.broadcast %269 : f32 to vector<1x256xf32>
    %271 = arith.mulf %270, %159 : vector<1x256xf32>
    %272 = arith.addf %268, %271 : vector<1x256xf32>
    %c13 = arith.constant 13 : index
    %c0_155 = arith.constant 0 : index
    %273 = vector.load %arg3[%c13, %c0_155] : memref<16x256xf32, #tpu.memory_space<vmem>>, vector<1x256xf32>
    tpu.vector_store %arg3[%c13, %c0_155], %272 {strides = array<i32>} : memref<16x256xf32, #tpu.memory_space<vmem>>, vector<1x256xf32>,
    %c6_156 = arith.constant 6 : index
    %274 = memref.load %arg1[%c6_156] : memref<8xf32, #tpu.memory_space<smem>>
    %c0_157 = arith.constant 0 : index
    %c6_158 = arith.constant 6 : index
    %275 = memref.load %arg0[%c0_157, %c6_158] : memref<4x8xf32, #tpu.memory_space<smem>>
    %276 = vector.broadcast %275 : f32 to vector<1x256xf32>
    %277 = arith.mulf %276, %156 : vector<1x256xf32>
    %278 = vector.broadcast %274 : f32 to vector<1x256xf32>
    %279 = arith.addf %278, %277 : vector<1x256xf32>
    %c1_159 = arith.constant 1 : index
    %c6_160 = arith.constant 6 : index
    %280 = memref.load %arg0[%c1_159, %c6_160] : memref<4x8xf32, #tpu.memory_space<smem>>
    %281 = vector.broadcast %280 : f32 to vector<1x256xf32>
    %282 = arith.mulf %281, %157 : vector<1x256xf32>
    %283 = arith.addf %279, %282 : vector<1x256xf32>
    %c2_161 = arith.constant 2 : index
    %c6_162 = arith.constant 6 : index
    %284 = memref.load %arg0[%c2_161, %c6_162] : memref<4x8xf32, #tpu.memory_space<smem>>
    %285 = vector.broadcast %284 : f32 to vector<1x256xf32>
    %286 = arith.mulf %285, %158 : vector<1x256xf32>
    %287 = arith.addf %283, %286 : vector<1x256xf32>
    %c3_163 = arith.constant 3 : index
    %c6_164 = arith.constant 6 : index
    %288 = memref.load %arg0[%c3_163, %c6_164] : memref<4x8xf32, #tpu.memory_space<smem>>
    %289 = vector.broadcast %288 : f32 to vector<1x256xf32>
    %290 = arith.mulf %289, %159 : vector<1x256xf32>
    %291 = arith.addf %287, %290 : vector<1x256xf32>
    %c14 = arith.constant 14 : index
    %c0_165 = arith.constant 0 : index
    %292 = vector.load %arg3[%c14, %c0_165] : memref<16x256xf32, #tpu.memory_space<vmem>>, vector<1x256xf32>
    tpu.vector_store %arg3[%c14, %c0_165], %291 {strides = array<i32>} : memref<16x256xf32, #tpu.memory_space<vmem>>, vector<1x256xf32>,
    %c7_166 = arith.constant 7 : index
    %293 = memref.load %arg1[%c7_166] : memref<8xf32, #tpu.memory_space<smem>>
    %c0_167 = arith.constant 0 : index
    %c7_168 = arith.constant 7 : index
    %294 = memref.load %arg0[%c0_167, %c7_168] : memref<4x8xf32, #tpu.memory_space<smem>>
    %295 = vector.broadcast %294 : f32 to vector<1x256xf32>
    %296 = arith.mulf %295, %156 : vector<1x256xf32>
    %297 = vector.broadcast %293 : f32 to vector<1x256xf32>
    %298 = arith.addf %297, %296 : vector<1x256xf32>
    %c1_169 = arith.constant 1 : index
    %c7_170 = arith.constant 7 : index
    %299 = memref.load %arg0[%c1_169, %c7_170] : memref<4x8xf32, #tpu.memory_space<smem>>
    %300 = vector.broadcast %299 : f32 to vector<1x256xf32>
    %301 = arith.mulf %300, %157 : vector<1x256xf32>
    %302 = arith.addf %298, %301 : vector<1x256xf32>
    %c2_171 = arith.constant 2 : index
    %c7_172 = arith.constant 7 : index
    %303 = memref.load %arg0[%c2_171, %c7_172] : memref<4x8xf32, #tpu.memory_space<smem>>
    %304 = vector.broadcast %303 : f32 to vector<1x256xf32>
    %305 = arith.mulf %304, %158 : vector<1x256xf32>
    %306 = arith.addf %302, %305 : vector<1x256xf32>
    %c3_173 = arith.constant 3 : index
    %c7_174 = arith.constant 7 : index
    %307 = memref.load %arg0[%c3_173, %c7_174] : memref<4x8xf32, #tpu.memory_space<smem>>
    %308 = vector.broadcast %307 : f32 to vector<1x256xf32>
    %309 = arith.mulf %308, %159 : vector<1x256xf32>
    %310 = arith.addf %306, %309 : vector<1x256xf32>
    %c15 = arith.constant 15 : index
    %c0_175 = arith.constant 0 : index
    %311 = vector.load %arg3[%c15, %c0_175] : memref<16x256xf32, #tpu.memory_space<vmem>>, vector<1x256xf32>
    tpu.vector_store %arg3[%c15, %c0_175], %310 {strides = array<i32>} : memref<16x256xf32, #tpu.memory_space<vmem>>, vector<1x256xf32>,
    return
  }
}

</mosaic_0001>

<bundles_post_ra>
// kernel: tpu_custom_call.1
= control target key start
LH: loop header
LB: loop body
LE: loop exit
PB: predicated region body
PF: predicated region fallthrough
CT: control target
= control target key end

     0   :  { %s1040_s0 = inlined_call_operand.hbm [shape: f32[4,8], index: 0, kind: input, shape index: {}]   ;;  %s1041_s1 = inlined_call_operand.vmem [shape: f32[8], index: 1, kind: input, shape index: {}]   ;;  %s1042_s2 = inlined_call_operand.hbm [shape: f32[8,256], index: 2, kind: input, shape index: {}]   ;;  %s1043_s3 = inlined_call_operand.hbm [shape: f32[16,256], index: 3, kind: output, shape index: {}]  }
   0x1   :  { %1056 = sst [smem:[#allocation25_spill]] %s1043_s3 }
   0x2   :  { %8 = vsyncpa [#allocation5], 0 }
   0x3   :  { %9 = vsyncpa [#allocation6], 0 }
   0x4   :  { %10 = vsyncpa [#allocation3], 0 }
   0x5   :  { %11 = vsyncpa [#allocation4], 0  ;;  %s26_s14 = sshll.u32 %s1041_s1, 4  ;;  %s505_s17 = scalar_lea.hbm %s1040_s0, 64  ;;  %s27_s14 = int_to_ptr.vmem [resolvable:$true] %s26_s14 }
   0x6   :  { %p506_p0 = scmp.ne.s32.totalorder %s1040_s0, %s505_s17  ;;  %p509_p1 = scmp.lt.u32.totalorder %s505_s17, %s1040_s0 }
   0x8   :  { %p511_p2 = pnand %p509_p1, %p506_p0 }
   0xa   :  { %514 = shalt.err (!%p511_p2)
}
   0xb   :  { %s579_s22 = smov [#allocation2]   ;;  %s515_s1 = scalar_lea.vmem %s27_s14, 16 }
   0xc   :  { %19 = dma.hbm_to_smem %s1040_s0, 64, %s579_s22, [#allocation5]  }
   0xd   :  { %p516_p3 = scmp.ne.s32.totalorder %s27_s14, %s515_s1  ;;  %p520_p4 = scmp.lt.s32.totalorder %s27_s14, %s27_s14 }
   0xe   :  { %p521_p5 = scmp.lt.s32.totalorder %s515_s1, %s515_s1 }
  0x10   :  { %p522_p6 = por %p521_p5, %p520_p4 }
  0x12   :  { %p523_p7 = pnand %p522_p6, %p516_p3 }
  0x14   :  { %526 = shalt.err (!%p523_p7)
}
  0x15   :  { %s580_s25 = smov [#allocation7]   ;;  %s581_s26 = smov [#allocation8]  }
  0x16   :  { %29 = dma.vmem_to_smem %s27_s14, 16, %s580_s25, [#allocation6]  }
  0x17   :  { %s36_s27 = sshll.u32 %s581_s26, 4  ;;  %s527_s30 = scalar_lea.hbm %s1042_s2, 256  ;;  %s37_s27 = int_to_ptr.vmem [resolvable:$true] %s36_s27 }
  0x18   :  { %p528_p8 = scmp.ne.s32.totalorder %s1042_s2, %s527_s30  ;;  %p531_p9 = scmp.lt.u32.totalorder %s527_s30, %s1042_s2 }
  0x1a   :  { %p533_p10 = pnand %p531_p9, %p528_p8 }
  0x1c   :  { %536 = shalt.err (!%p533_p10)
}
  0x1d   :  { %s537_s7 = scalar_lea.vmem %s37_s27, 256  ;;  %p542_p12 = scmp.lt.s32.totalorder %s37_s27, %s37_s27 }
  0x1e   :  { %p538_p11 = scmp.ne.s32.totalorder %s37_s27, %s537_s7  ;;  %p543_p13 = scmp.lt.s32.totalorder %s537_s7, %s537_s7 }
  0x20   :  { %p544_p0 = por %p543_p13, %p542_p12 }
  0x22   :  { %p545_p1 = pnand %p544_p0, %p538_p11 }
  0x24   :  { %548 = shalt.err (!%p545_p1)
}
  0x25   :  { %39 = dma.hbm_to_vmem [thread:$0]  %s1042_s2, 256, %s37_s27, [#allocation3]  }
  0x26   :  { %571 = dma.done.wait [#allocation5], 64  }
  0x27   :  { %572 = vsyncadd [#allocation5], 4294967232 }
  0x28   :  { %573 = dma.done.wait [#allocation6], 16  }
  0x29   :  { %574 = vsyncadd [#allocation6], 4294967280 }
  0x2a   :  { %575 = dma.done.wait [#allocation3], 256  }
  0x2b   :  { %576 = vsyncadd [#allocation3], 4294967040 }
  0x2c   :  { %49 = sfence }
  0x2d   :  { %s632_s10 = sld [smem:[#allocation7]]  ;;  %v640_v0 = vld [vmem:[#allocation8] ss:$8 sm:$0x3]  ;;  %s644_s14 = sld [smem:[#allocation7 + $0x1]]  ;;  %v75_v3 = vlaneseq }
  0x2e   :  { %s634_s11 = sld [smem:[#allocation2]]  ;;  %v646_v1 = vld [vmem:[#allocation8 + $0x1] ss:$8 sm:$0x3]  ;;  %s650_s15 = sld [smem:[#allocation2 + $0x1]] }
  0x2f   :  { %s636_s12 = sld [smem:[#allocation2 + $0x80]]  ;;  %v648_v2 = vld [vmem:[#allocation8 + $0x2] ss:$8 sm:$0x3]  ;;  %s652_s16 = sld [smem:[#allocation2 + $0x81]]  ;;  %vm675_vm0 = vcmp.lt.s32.totalorder %v75_v3, 256 }
  0x30   :  { %s638_s13 = sld [smem:[#allocation2 + $0x100]]  ;;  %v654_v4 = vld [vmem:[#allocation8 + $0x3] ss:$8 sm:$0x3]  ;;  %s656_s17 = sld [smem:[#allocation2 + $0x101]] }
  0x31   :  { %s642_s2 = sld [smem:[#allocation2 + $0x180]]  ;;  %s658_s18 = sld [smem:[#allocation2 + $0x181]] }
  0x32   :  { %s660_s19 = sld [smem:[#allocation7 + $0x2]]  ;;  %s681_s24 = sld [smem:[#allocation7 + $0x3]] }
  0x33   :  { %s662_s20 = sld [smem:[#allocation2 + $0x2]]  ;;  %v61_v6 = vstv %s632_s10  ;;  %v85_v14 = vstv %s644_s14  ;;  %s691_s1 = sld [smem:[#allocation2 + $0x3]] }
  0x34   :  { %v59_v5 = vstv %s634_s11  ;;  %s666_s21 = sld [smem:[#allocation2 + $0x82]]  ;;  %s693_s25 = sld [smem:[#allocation2 + $0x83]]  ;;  %v83_v17 = vstv %s650_s15 }
  0x35   :  { %s668_s22 = sld [smem:[#allocation2 + $0x102]]  ;;  %v60_v7 = vmul.f32 %v59_v5, %v640_v0  ;;  %v64_v8 = vstv %s636_s12  ;;  %v88_v18 = vstv %s652_s16  ;;  %s702_s26 = sld [smem:[#allocation2 + $0x103]]  ;;  %v84_v19 = vmul.f32 %v83_v17, %v640_v0 }
  0x36   :  { %v68_v9 = vstv %s638_s13  ;;  %s679_s23 = sld [smem:[#allocation2 + $0x182]]  ;;  %v65_v11 = vmul.f32 %v64_v8, %v646_v1  ;;  %s704_s27 = sld [smem:[#allocation2 + $0x183]]  ;;  %v89_v20 = vmul.f32 %v88_v18, %v646_v1  ;;  %v92_v21 = vstv %s656_s17 }
  0x37   :  { %v69_v12 = vmul.f32 %v68_v9, %v648_v2  ;;  %v72_v13 = vstv %s642_s2  ;;  %v62_v15 = vadd.f32 %v61_v6, %v60_v7  ;;  %v96_v22 = vstv %s658_s18  ;;  %s714_s28 = sld [smem:[#allocation7 + $0x4]]  ;;  %s743_s0 = sld [smem:[#allocation7 + $0x5]] }
  0x38   :  { %1061 = sst [smem:[#allocation16_spill]] %s681_s24  ;;  %v73_v16 = vmul.f32 %v72_v13, %v654_v4  ;;  %s716_s29 = sld [smem:[#allocation2 + $0x4]]  ;;  %v93_v24 = vmul.f32 %v92_v21, %v648_v2  ;;  %v97_v25 = vmul.f32 %v96_v22, %v654_v4  ;;  %v86_v27 = vadd.f32 %v85_v14, %v84_v19 }
  0x39   :  { %1062 = sst [smem:[#allocation17_spill]] %s691_s1  ;;  %v66_v23 = vadd.f32 %v65_v11, %v62_v15  ;;  %v104_v26 = vstv %s662_s20  ;;  %s725_s30 = sld [smem:[#allocation2 + $0x84]]  ;;  %v106_v29 = vstv %s660_s19  ;;  %v125_v40 = vstv %s691_s1 }
  0x3a   :  { %1063 = sst [smem:[#allocation18_spill]] %s693_s25  ;;  %v105_v28 = vmul.f32 %v104_v26, %v640_v0  ;;  %v109_v30 = vstv %s666_s21  ;;  %s745_s6 = sld [smem:[#allocation2 + $0x5]]  ;;  %v90_v35 = vadd.f32 %v89_v20, %v86_v27  ;;  %v127_v41 = vstv %s681_s24 }
  0x3b   :  { %1057 = sst [smem:[#allocation14_spill]] %s668_s22  ;;  %s727_s4 = sld [smem:[#allocation2 + $0x104]]  ;;  %v70_v31 = vadd.f32 %v69_v12, %v66_v23  ;;  %v110_v32 = vmul.f32 %v109_v30, %v646_v1  ;;  %v113_v33 = vstv %s668_s22  ;;  %v130_v42 = vstv %s693_s25 }
  0x3c   :  { %1060 = sst [smem:[#allocation15_spill]] %s679_s23  ;;  %s736_s5 = sld [smem:[#allocation2 + $0x184]]  ;;  %v117_v34 = vstv %s679_s23  ;;  %v107_v36 = vadd.f32 %v106_v29, %v105_v28  ;;  %v114_v37 = vmul.f32 %v113_v33, %v648_v2  ;;  %v94_v43 = vadd.f32 %v93_v24, %v90_v35 }
  0x3d   :  { %1064 = sst [smem:[#allocation19_spill]] %s704_s27  ;;  %v118_v38 = vmul.f32 %v117_v34, %v654_v4  ;;  %v74_v39 = vadd.f32 %v73_v16, %v70_v31  ;;  %v126_v45 = vmul.f32 %v125_v40, %v640_v0  ;;  %v131_v46 = vmul.f32 %v130_v42, %v646_v1  ;;  %s770_s3 = sld [smem:[#allocation7 + $0x6]] }
  0x3e   :  { %1065 = sst [smem:[#allocation20_spill]] %s716_s29  ;;  %s755_s7 = sld [smem:[#allocation2 + $0x85]]  ;;  %v111_v44 = vadd.f32 %v110_v32, %v107_v36  ;;  %v134_v47 = vstv %s702_s26  ;;  %v138_v48 = vstv %s704_s27  ;;  %v146_v49 = vstv %s716_s29 }
  0x3f   :  { %1066 = sst [smem:[#allocation21_spill]] %s725_s30  ;;  %s760_s8 = sld [smem:[#allocation2 + $0x105]]  ;;  %79 = vst.msk [vmem:[#allocation9] ss:$8 sm:$0x3] %vm675_vm0, %v74_v39  ;;  %v148_v50 = vstv %s714_s28  ;;  %v98_v51 = vadd.f32 %v97_v25, %v94_v43  ;;  %v128_v53 = vadd.f32 %v127_v41, %v126_v45  ;;  %v135_v54 = vmul.f32 %v134_v47, %v648_v2 }
  0x40   :  { %s762_s9 = sld [smem:[#allocation2 + $0x185]]  ;;  %s778_s23 = sld [smem:[#allocation2 + $0x6]]  ;;  %v115_v52 = vadd.f32 %v114_v37, %v111_v44  ;;  %v139_v55 = vmul.f32 %v138_v48, %v654_v4  ;;  %v147_v56 = vmul.f32 %v146_v49, %v640_v0  ;;  %v151_v57 = vstv %s725_s30 }
  0x41   :  { %1067 = sst [smem:[#allocation22_spill]] %s727_s4  ;;  %s780_s1 = sld [smem:[#allocation2 + $0x86]]  ;;  %v155_v58 = vstv %s727_s4  ;;  %100 = vst.msk [vmem:[#allocation9 + $0x1] ss:$8 sm:$0x3] %vm675_vm0, %v98_v51  ;;  %v132_v60 = vadd.f32 %v131_v46, %v128_v53  ;;  %v152_v61 = vmul.f32 %v151_v57, %v646_v1  ;;  %v167_v7 = vstv %s745_s6 }
  0x42   :  { %s787_s25 = sld [smem:[#allocation2 + $0x106]]  ;;  %s799_s24 = sld [smem:[#allocation2 + $0x7]]  ;;  %v119_v59 = vadd.f32 %v118_v38, %v115_v52  ;;  %v156_v62 = vmul.f32 %v155_v58, %v648_v2  ;;  %v149_v63 = vadd.f32 %v148_v50, %v147_v56  ;;  %v159_v3 = vstv %s736_s5 }
  0x43   :  { %s797_s22 = sld [smem:[#allocation2 + $0x186]]  ;;  %s809_s27 = sld [smem:[#allocation7 + $0x7]]  ;;  %v169_v11 = vstv %s743_s0  ;;  %v136_v12 = vadd.f32 %v135_v54, %v132_v60  ;;  %v160_v15 = vmul.f32 %v159_v3, %v654_v4  ;;  %v168_v16 = vmul.f32 %v167_v7, %v640_v0  ;;  %v869_v60 = vld [vmem:[#allocation8 + $0x4] ss:$8 sm:$0x3] }
  0x44   :  { %s811_s29 = sld [smem:[#allocation2 + $0x87]]  ;;  %121 = vst.msk [vmem:[#allocation9 + $0x2] ss:$8 sm:$0x3] %vm675_vm0, %v119_v59  ;;  %v172_v19 = vstv %s755_s7  ;;  %v153_v20 = vadd.f32 %v152_v61, %v149_v63  ;;  %v190_v37 = vstv %s770_s3  ;;  %s582_s3 = smov [#allocation9]  }
  0x45   :  { %s818_s30 = sld [smem:[#allocation2 + $0x107]]  ;;  %v173_v23 = vmul.f32 %v172_v19, %v646_v1  ;;  %v176_v24 = vstv %s760_s8  ;;  %v140_v27 = vadd.f32 %v139_v55, %v136_v12  ;;  %v170_v28 = vadd.f32 %v169_v11, %v168_v16  ;;  %v871_v61 = vld [vmem:[#allocation8 + $0x5] ss:$8 sm:$0x3]  ;;  %s409_s18 = sshll.u32 %s582_s3, 4  ;;  %s410_s18 = int_to_ptr.vmem [resolvable:$true] %s409_s18 }
  0x46   :  { %s820_s4 = sld [smem:[#allocation2 + $0x187]]  ;;  %v180_v25 = vstv %s762_s9  ;;  %v177_v31 = vmul.f32 %v176_v24, %v648_v2  ;;  %v157_v35 = vadd.f32 %v156_v62, %v153_v20  ;;  %v188_v36 = vstv %s778_s23  ;;  %v879_v16 = vld [vmem:[#allocation8 + $0x6] ss:$8 sm:$0x3]  ;;  %s549_s19 = scalar_lea.vmem %s410_s18, 512 }
  0x47   :  { %v181_v32 = vmul.f32 %v180_v25, %v654_v4  ;;  %v193_v38 = vstv %s780_s1  ;;  %142 = vst.msk [vmem:[#allocation9 + $0x3] ss:$8 sm:$0x3] %vm675_vm0, %v140_v27  ;;  %v174_v39 = vadd.f32 %v173_v23, %v170_v28  ;;  %v189_v43 = vmul.f32 %v188_v36, %v640_v0  ;;  %v886_v28 = vld [vmem:[#allocation8 + $0x7] ss:$8 sm:$0x3]  ;;  %p550_p2 = scmp.ne.s32.totalorder %s410_s18, %s549_s19  ;;  %p554_p3 = scmp.lt.s32.totalorder %s410_s18, %s410_s18 }
  0x48   :  { %v194_v44 = vmul.f32 %v193_v38, %v646_v1  ;;  %v197_v45 = vstv %s787_s25  ;;  %v161_v46 = vadd.f32 %v160_v15, %v157_v35  ;;  %v209_v53 = vstv %s799_s24  ;;  %p555_p4 = scmp.lt.s32.totalorder %s549_s19, %s549_s19 }
  0x49   :  { %1068 = sst [smem:[#allocation23_spill]] %s797_s22  ;;  %v198_v51 = vmul.f32 %v197_v45, %v648_v2  ;;  %v201_v52 = vstv %s797_s22  ;;  %v178_v54 = vadd.f32 %v177_v31, %v174_v39  ;;  %v191_v55 = vadd.f32 %v190_v37, %v189_v43 }
  0x4a   :  { %v202_v56 = vmul.f32 %v201_v52, %v654_v4  ;;  %v210_v59 = vmul.f32 %v209_v53, %v640_v0  ;;  %163 = vst.msk [vmem:[#allocation9 + $0x4] ss:$8 sm:$0x3] %vm675_vm0, %v161_v46  ;;  %v211_v62 = vstv %s809_s27  ;;  %v214_v63 = vstv %s811_s29  ;;  %p556_p5 = por %p555_p4, %p554_p3 }
  0x4b   :  { %v218_v12 = vstv %s818_s30  ;;  %v182_v0 = vadd.f32 %v181_v32, %v178_v54  ;;  %v195_v20 = vadd.f32 %v194_v44, %v191_v55  ;;  %v215_v27 = vmul.f32 %v214_v63, %v646_v1 }
  0x4c   :  { %1069 = sst [smem:[#allocation24_spill]] %s820_s4  ;;  %v222_v15 = vstv %s820_s4  ;;  %v212_v23 = vadd.f32 %v211_v62, %v210_v59  ;;  %v219_v31 = vmul.f32 %v218_v12, %v648_v2  ;;  %v239_v35 = vmul.f32 %v869_v60, %v59_v5  ;;  %p557_p6 = pnand %p556_p5, %p550_p2 }
  0x4d   :  { %v244_v32 = vmul.f32 %v871_v61, %v64_v8  ;;  %184 = vst.msk [vmem:[#allocation9 + $0x5] ss:$8 sm:$0x3] %vm675_vm0, %v182_v0  ;;  %v199_v1 = vadd.f32 %v198_v51, %v195_v20  ;;  %v223_v43 = vmul.f32 %v222_v15, %v654_v4  ;;  %v248_v2 = vmul.f32 %v879_v16, %v68_v9 }
  0x4e   :  { %v216_v39 = vadd.f32 %v215_v27, %v212_v23  ;;  %v241_v5 = vadd.f32 %v239_v35, %v61_v6  ;;  %v252_v8 = vmul.f32 %v886_v28, %v72_v13  ;;  %v260_v44 = vmul.f32 %v869_v60, %v83_v17 }
  0x4f   :  { %v265_v46 = vmul.f32 %v871_v61, %v88_v18  ;;  %v203_v51 = vadd.f32 %v202_v56, %v199_v1  ;;  %v269_v9 = vmul.f32 %v879_v16, %v92_v21  ;;  %v281_v6 = vmul.f32 %v869_v60, %v104_v26 }
  0x50   :  { %v220_v4 = vadd.f32 %v219_v31, %v216_v39  ;;  %v245_v54 = vadd.f32 %v244_v32, %v241_v5  ;;  %v262_v13 = vadd.f32 %v260_v44, %v85_v14  ;;  %v273_v17 = vmul.f32 %v886_v28, %v96_v22 }
  0x51   :  { %v286_v18 = vmul.f32 %v871_v61, %v109_v30  ;;  %205 = vst.msk [vmem:[#allocation9 + $0x6] ss:$8 sm:$0x3] %vm675_vm0, %v203_v51  ;;  %v283_v26 = vadd.f32 %v281_v6, %v106_v29  ;;  %v290_v55 = vmul.f32 %v879_v16, %v113_v33  ;;  %v302_v14 = vmul.f32 %v869_v60, %v125_v40 }
  0x52   :  { %v224_v21 = vadd.f32 %v223_v43, %v220_v4  ;;  %v249_v56 = vadd.f32 %v248_v2, %v245_v54  ;;  %v266_v22 = vadd.f32 %v265_v46, %v262_v13  ;;  %v294_v30 = vmul.f32 %v886_v28, %v117_v34 }
  0x53   :  { %v307_v59 = vmul.f32 %v871_v61, %v130_v42  ;;  %v287_v29 = vadd.f32 %v286_v18, %v283_v26  ;;  %v304_v33 = vadd.f32 %v302_v14, %v127_v41  ;;  %v311_v40 = vmul.f32 %v879_v16, %v134_v47 }
  0x54   :  { %226 = vst.msk [vmem:[#allocation9 + $0x7] ss:$8 sm:$0x3] %vm675_vm0, %v224_v21  ;;  %v323_v0 = vmul.f32 %v869_v60, %v146_v49  ;;  %v253_v20 = vadd.f32 %v252_v8, %v249_v56  ;;  %v270_v34 = vadd.f32 %v269_v9, %v266_v22  ;;  %v315_v42 = vmul.f32 %v886_v28, %v138_v48 }
  0x55   :  { %v328_v23 = vmul.f32 %v871_v61, %v151_v57  ;;  %v291_v27 = vadd.f32 %v290_v55, %v287_v29  ;;  %v308_v41 = vadd.f32 %v307_v59, %v304_v33  ;;  %v332_v49 = vmul.f32 %v879_v16, %v155_v58 }
  0x56   :  { %v325_v47 = vadd.f32 %v323_v0, %v148_v50  ;;  %255 = vst.msk [vmem:[#allocation9 + $0x10] ss:$8 sm:$0x3] %vm675_vm0, %v253_v20  ;;  %v274_v31 = vadd.f32 %v273_v17, %v270_v34  ;;  %v344_v48 = vmul.f32 %v869_v60, %v167_v7  ;;  %v349_v57 = vmul.f32 %v871_v61, %v172_v19 }
  0x57   :  { %v295_v35 = vadd.f32 %v294_v30, %v291_v27  ;;  %v312_v32 = vadd.f32 %v311_v40, %v308_v41  ;;  %v336_v58 = vmul.f32 %v886_v28, %v159_v3  ;;  %v353_v7 = vmul.f32 %v879_v16, %v176_v24 }
  0x58   :  { %v329_v50 = vadd.f32 %v328_v23, %v325_v47  ;;  %276 = vst.msk [vmem:[#allocation9 + $0x11] ss:$8 sm:$0x3] %vm675_vm0, %v274_v31  ;;  %v346_v1 = vadd.f32 %v344_v48, %v169_v11  ;;  %v365_v19 = vmul.f32 %v869_v60, %v188_v36  ;;  %v370_v39 = vmul.f32 %v871_v61, %v193_v38 }
  0x59   :  { %297 = vst.msk [vmem:[#allocation9 + $0x12] ss:$8 sm:$0x3] %vm675_vm0, %v295_v35  ;;  %v316_v3 = vadd.f32 %v315_v42, %v312_v32  ;;  %v357_v11 = vmul.f32 %v886_v28, %v180_v25  ;;  %v386_v2 = vmul.f32 %v869_v60, %v209_v53  ;;  %v374_v36 = vmul.f32 %v879_v16, %v197_v45 }
  0x5a   :  { %v333_v43 = vadd.f32 %v332_v49, %v329_v50  ;;  %v350_v24 = vadd.f32 %v349_v57, %v346_v1  ;;  %v367_v5 = vadd.f32 %v365_v19, %v190_v37  ;;  %v391_v38 = vmul.f32 %v871_v61, %v214_v63 }
  0x5b   :  { %318 = vst.msk [vmem:[#allocation9 + $0x13] ss:$8 sm:$0x3] %vm675_vm0, %v316_v3  ;;  %v388_v44 = vadd.f32 %v386_v2, %v211_v62  ;;  %v395_v25 = vmul.f32 %v879_v16, %v218_v12  ;;  %v378_v37 = vmul.f32 %v886_v28, %v201_v52  ;;  %v399_v60 = vmul.f32 %v886_v28, %v222_v15 }
  0x5c   :  { %v337_v8 = vadd.f32 %v336_v58, %v333_v43  ;;  %v354_v46 = vadd.f32 %v353_v7, %v350_v24  ;;  %v371_v53 = vadd.f32 %v370_v39, %v367_v5 }
  0x5d   :  { %v392_v45 = vadd.f32 %v391_v38, %v388_v44 }
  0x5e   :  { %339 = vst.msk [vmem:[#allocation9 + $0x14] ss:$8 sm:$0x3] %vm675_vm0, %v337_v8  ;;  %v358_v61 = vadd.f32 %v357_v11, %v354_v46  ;;  %v375_v63 = vadd.f32 %v374_v36, %v371_v53 }
  0x5f   :  { %v396_v62 = vadd.f32 %v395_v25, %v392_v45 }
  0x60   :  { %360 = vst.msk [vmem:[#allocation9 + $0x15] ss:$8 sm:$0x3] %vm675_vm0, %v358_v61  ;;  %v379_v12 = vadd.f32 %v378_v37, %v375_v63 }
  0x61   :  { %v400_v16 = vadd.f32 %v399_v60, %v396_v62 }
  0x62   :  { %381 = vst.msk [vmem:[#allocation9 + $0x16] ss:$8 sm:$0x3] %vm675_vm0, %v379_v12 }
  0x63   :  { %402 = vst.msk [vmem:[#allocation9 + $0x17] ss:$8 sm:$0x3] %vm675_vm0, %v400_v16 }
  0x64   :  { %560 = shalt.err (!%p557_p6)
}
  0x65   :  { %s1081_s22 = sld [smem:[#allocation25_spill]] }
  0x6b   :  { %s561_s23 = scalar_lea.hbm %s1081_s22, 512 }
  0x6c   :  { %p562_p7 = scmp.ne.s32.totalorder %s1081_s22, %s561_s23  ;;  %p565_p8 = scmp.lt.u32.totalorder %s561_s23, %s1081_s22 }
  0x6e   :  { %p567_p9 = pnand %p565_p8, %p562_p7 }
  0x70   :  { %570 = shalt.err (!%p567_p9)
}
  0x71   :  { %s583_s27 = smov 256   ;;  %s584_s28 = smov 16  }
  0x72   :  { %415 = dma.vmem_to_hbm [thread:$0]  %s410_s18, 512, %s1081_s22, [#allocation4], %s583_s27, %s583_s27, %s584_s28  }
  0x73   :  { %577 = dma.done.wait [#allocation4], 512  }
  0x74   :  { %578 = vsyncadd [#allocation4], 4294966784 }
  0x75   :  { %419 = vsyncpa [#allocation3], 1 }
  0x76   :  { %420 = vsyncpa [#allocation4], 1 }
  0x77   :  { %421 = vsyncpa [#allocation5], 1 }
  0x78   :  { %422 = vsyncpa [#allocation6], 1 }

</bundles_post_ra>
